<compile_context>
chip_gen: v5e
topology: v5e:2x2
jax: 0.10.0
libtpu: 0.0.40
codegen_flags: <defaults>
</compile_context>

<pallas_src>
import functools

import jax
import jax.numpy as jnp
from jax.experimental import pallas as pl
from jax.experimental.pallas import tpu as pltpu


def _round_up(x, m):
    return (x + m - 1) // m * m


def _vmem_capacity_bytes():
    try:
        return int(pltpu.get_tpu_info().vmem_capacity_bytes)
    except Exception:
        return 64 << 20  # conservative (v7x per-TensorCore VMEM)


def _vmem_limit(nbytes_needed, capacity):
    # Request what the pipeline needs plus slack, but always leave >= 12 MiB
    # headroom for Mosaic internal scratch/semaphores (matters on v7x: 64 MiB).
    ceiling = capacity - (12 << 20)
    return int(min(max(nbytes_needed + (8 << 20), 32 << 20), ceiling))


# ---------------------------------------------------------------------------
# Fused path: one pallas_call.
#   step 0: fts = seq @ W^T  -> resident bf16 VMEM scratch
#   every step: out_tile = PReLU(adj_tile @ fts + bias)
# adj is cast to bf16 in-register (no extra HBM pass); accumulation in f32.
# ---------------------------------------------------------------------------
def _gcn_fused_kernel(alpha_ref, seq_ref, wT_ref, adj_ref, bias_ref,
                      out_ref, fts_ref):
    @pl.when(pl.program_id(0) == 0)
    def _():
        fts_ref[...] = jnp.dot(
            seq_ref[...], wT_ref[...], preferred_element_type=jnp.float32
        ).astype(fts_ref.dtype)

    acc = jnp.dot(adj_ref[...].astype(jnp.bfloat16), fts_ref[...],
                  preferred_element_type=jnp.float32)
    acc = acc + bias_ref[...]
    a = alpha_ref[0]
    out_ref[...] = jnp.where(acc > 0, acc, a * acc).astype(out_ref.dtype)


# ---------------------------------------------------------------------------
# Two-stage fallback for large graphs.
# ---------------------------------------------------------------------------
def _linear_kernel(seq_ref, wT_ref, fts_ref):
    fts_ref[...] = jnp.dot(
        seq_ref[...], wT_ref[...], preferred_element_type=jnp.float32
    ).astype(fts_ref.dtype)


def _gcn_agg_kernel(n_valid, tk, alpha_ref, adj_ref, fts_ref, bias_ref,
                    out_ref, acc_ref):
    k = pl.program_id(1)

    @pl.when(k == 0)
    def _():
        acc_ref[...] = jnp.zeros_like(acc_ref)

    adj_blk = adj_ref[...]
    fts_blk = fts_ref[...]
    if n_valid % tk != 0:
        # Last K tile runs past the true contraction length; zero the
        # out-of-bounds columns/rows (their padded contents are undefined).
        col = k * tk + jax.lax.broadcasted_iota(jnp.int32, adj_blk.shape, 1)
        adj_blk = jnp.where(col < n_valid, adj_blk, jnp.zeros_like(adj_blk))
        row = k * tk + jax.lax.broadcasted_iota(jnp.int32, fts_blk.shape, 0)
        fts_blk = jnp.where(row < n_valid, fts_blk, jnp.zeros_like(fts_blk))

    acc_ref[...] += jnp.dot(adj_blk.astype(jnp.bfloat16),
                            fts_blk.astype(jnp.bfloat16),
                            preferred_element_type=jnp.float32)

    @pl.when(k == pl.num_programs(1) - 1)
    def _():
        res = acc_ref[...] + bias_ref[...]
        a = alpha_ref[0]
        out_ref[...] = jnp.where(res > 0, res, a * res).astype(out_ref.dtype)


def gcn_forward(seq, adj, weight, bias, alpha, *, force_two_stage=False,
                tk=None):
    """GCN forward: PReLU(adj @ (seq @ W^T) + bias).

    seq: (N, in_ft), adj: (N, N) dense (f32 or bf16), weight: (out_ft, in_ft),
    bias: (out_ft,), alpha: PReLU scalar. Returns (N, out_ft) float32.
    """
    N, fin = seq.shape
    fout = weight.shape[0]

    seq = seq.astype(jnp.float32)
    wT = weight.T.astype(jnp.float32)                    # (fin, fout)
    bias2d = bias.reshape(1, fout).astype(jnp.float32)
    alpha_arr = jnp.reshape(alpha, (1,)).astype(jnp.float32)

    cap = _vmem_capacity_bytes()
    budget = cap - (16 << 20)
    adj_isz = jnp.dtype(adj.dtype).itemsize

    # Row tile: 256 on 128-MiB-VMEM chips when the graph is big enough to
    # benefit; otherwise 128 (MXU height, v7x VMEM friendly).
    tm = 256 if (cap >= (100 << 20) and N >= 512) else 128
    tm = min(tm, N)
    n_row = pl.cdiv(N, tm)

    # ---- Fused single-pass path (fts resident in VMEM) ---------------------
    fused_bytes = (2 * tm * N * adj_isz     # adj row tiles, double-buffered
                   + 2 * N * fin * 4        # seq (constant block)
                   + 2 * fin * fout * 4     # W^T
                   + N * fout * 2           # resident bf16 fts scratch
                   + 2 * tm * fout * 4)     # out tiles
    if not force_two_stage and fused_bytes <= budget:
        return pl.pallas_call(
            _gcn_fused_kernel,
            out_shape=jax.ShapeDtypeStruct((N, fout), jnp.float32),
            grid_spec=pltpu.PrefetchScalarGridSpec(
                num_scalar_prefetch=0,
                grid=(n_row,),
                in_specs=[
                    pl.BlockSpec(memory_space=pltpu.MemorySpace.SMEM),  # alpha
                    pl.BlockSpec((N, fin), lambda i: (0, 0)),           # seq
                    pl.BlockSpec((fin, fout), lambda i: (0, 0)),        # W^T
                    pl.BlockSpec((tm, N), lambda i: (i, 0)),            # adj rows
                    pl.BlockSpec((1, fout), lambda i: (0, 0)),          # bias
                ],
                out_specs=pl.BlockSpec((tm, fout), lambda i: (i, 0)),
                scratch_shapes=[pltpu.VMEM((N, fout), jnp.bfloat16)],
            ),
            compiler_params=pltpu.CompilerParams(
                dimension_semantics=("arbitrary",),   # fts scratch is carried
                vmem_limit_bytes=_vmem_limit(fused_bytes, cap),
            ),
        )(alpha_arr, seq, wT, adj, bias2d)

    # ---- Stage 1: fts = seq @ W^T (bf16 -> stage 2 streams half the bytes) --
    s1_bytes = 2 * tm * fin * 4 + 2 * fin * fout * 4 + 2 * tm * fout * 2
    fts = pl.pallas_call(
        _linear_kernel,
        out_shape=jax.ShapeDtypeStruct((N, fout), jnp.bfloat16),
        grid_spec=pltpu.PrefetchScalarGridSpec(
            num_scalar_prefetch=0,
            grid=(n_row,),
            in_specs=[
                pl.BlockSpec((tm, fin), lambda i: (i, 0)),
                pl.BlockSpec((fin, fout), lambda i: (0, 0)),
            ],
            out_specs=pl.BlockSpec((tm, fout), lambda i: (i, 0)),
        ),
        compiler_params=pltpu.CompilerParams(
            dimension_semantics=("parallel",),
            vmem_limit_bytes=_vmem_limit(s1_bytes, cap),
        ),
    )(seq, wT)

    # ---- Stage 2: K-tiled out = PReLU(adj @ fts + bias) ---------------------
    if tk is None:
        fixed = tm * fout * 4 + 2 * tm * fout * 4 + (1 << 20)
        per_tk = 2 * tm * adj_isz + 2 * fout * 2
        tk = max(128, ((budget - fixed) // per_tk) // 128 * 128)
    tk = int(min(tk, _round_up(N, 128)))
    n_k = pl.cdiv(N, tk)

    s2_bytes = (2 * tm * tk * adj_isz + 2 * tk * fout * 2
                + tm * fout * 4 + 2 * tm * fout * 4)

    kernel = functools.partial(_gcn_agg_kernel, N, tk)
    return pl.pallas_call(
        kernel,
        out_shape=jax.ShapeDtypeStruct((N, fout), jnp.float32),
        grid_spec=pltpu.PrefetchScalarGridSpec(
            num_scalar_prefetch=0,
            grid=(n_row, n_k),
            in_specs=[
                pl.BlockSpec(memory_space=pltpu.MemorySpace.SMEM),   # alpha
                pl.BlockSpec((tm, tk), lambda i, k: (i, k)),         # adj tile
                pl.BlockSpec((tk, fout), lambda i, k: (k, 0)),       # fts tile
                pl.BlockSpec((1, fout), lambda i, k: (0, 0)),        # bias
            ],
            out_specs=pl.BlockSpec((tm, fout), lambda i, k: (i, 0)),
            scratch_shapes=[pltpu.VMEM((tm, fout), jnp.float32)],
        ),
        compiler_params=pltpu.CompilerParams(
            dimension_semantics=("parallel", "arbitrary"),
            vmem_limit_bytes=_vmem_limit(s2_bytes, cap),
        ),
    )(alpha_arr, adj, fts, bias2d)


if __name__ == "__main__":
    # Small deterministic example; N is deliberately NOT a multiple of the
    # 128-row tile so the partial-tile path is exercised.
    N, in_ft, out_ft = 200, 16, 64

    key = jax.random.PRNGKey(0)
    k_seq, k_adj, k_w = jax.random.split(key, 3)

    seq = jax.random.normal(k_seq, (N, in_ft), dtype=jnp.float32)
    adj = jax.random.uniform(k_adj, (N, N), dtype=jnp.float32)
    adj = adj / jnp.sum(adj, axis=-1, keepdims=True)   # row-normalized adjacency

    # Parameter init mirroring the module: xavier_normal_(gain=1.414),
    # bias filled with 0, PReLU default alpha = 0.25.
    gain = 1.414
    std = gain * (2.0 / (in_ft + out_ft)) ** 0.5
    weight = std * jax.random.normal(k_w, (out_ft, in_ft), dtype=jnp.float32)
    bias = jnp.zeros((out_ft,), dtype=jnp.float32)
    alpha = jnp.float32(0.25)

    # Pure-JAX f32 reference; kernel uses bf16 MXU inputs, so tolerance is looser.
    ref = adj @ (seq @ weight.T) + bias
    ref = jnp.where(ref > 0, ref, alpha * ref)

    # Fused single-pass path (the common case).
    out = jax.block_until_ready(gcn_forward(seq, adj, weight, bias, alpha))
    assert out.shape == (N, out_ft)
    assert jnp.allclose(out, ref, atol=2e-2, rtol=2e-2), float(
        jnp.max(jnp.abs(out - ref)))

    # Large-graph fallback (two calls, K-tiled aggregation with partial-K mask)
    # exercised explicitly so both code paths are validated.
    out2 = jax.block_until_ready(
        gcn_forward(seq, adj, weight, bias, alpha, force_two_stage=True, tk=128))
    assert jnp.allclose(out2, ref, atol=2e-2, rtol=2e-2), float(
        jnp.max(jnp.abs(out2 - ref)))

    print("KERNEL_OK")
</pallas_src>

<mosaic_0001>
module attributes {stable_mosaic.version = 11 : i64} {
  func.func @_gcn_fused_kernel(%arg0: i32, %arg1: memref<1xf32, #tpu.memory_space<smem>>, %arg2: memref<200x16xf32, #tpu.memory_space<vmem>>, %arg3: memref<16x64xf32, #tpu.memory_space<vmem>>, %arg4: memref<128x200xf32, #tpu.memory_space<vmem>>, %arg5: memref<1x64xf32, #tpu.memory_space<vmem>>, %arg6: memref<128x64xf32, #tpu.memory_space<vmem>>, %arg7: memref<200x64xbf16, #tpu.memory_space<vmem>>) attributes {dimension_semantics = [#tpu.dimension_semantics<arbitrary>], iteration_bounds = array<i64: 2>, scalar_prefetch = 0 : i64, scratch_operands = 1 : i64, tpu.core_type = #tpu.core_type<tc>, window_params = [{transform_indices = @transform_0, window_bounds = array<i64: 1>}, {pipeline_mode = #tpu.pipeline_mode<synchronous>, transform_indices = @transform_1, window_bounds = array<i64: 200, 16>}, {pipeline_mode = #tpu.pipeline_mode<synchronous>, transform_indices = @transform_2, window_bounds = array<i64: 16, 64>}, {transform_indices = @transform_3, window_bounds = array<i64: 128, 200>}, {pipeline_mode = #tpu.pipeline_mode<synchronous>, transform_indices = @transform_4, window_bounds = array<i64: 1, 64>}, {transform_indices = @transform_5, window_bounds = array<i64: 128, 64>}]} {
    %c0_i32 = arith.constant 0 : i32
    %0 = arith.cmpi eq, %arg0, %c0_i32 : i32
    %1 = arith.extui %0 : i1 to i32
    %c0_i32_0 = arith.constant 0 : i32
    %2 = arith.cmpi ne, %1, %c0_i32_0 : i32
    scf.if %2 {
      %c0_10 = arith.constant 0 : index
      %c0_11 = arith.constant 0 : index
      %17 = vector.load %arg2[%c0_10, %c0_11] : memref<200x16xf32, #tpu.memory_space<vmem>>, vector<200x16xf32>
      %c0_12 = arith.constant 0 : index
      %c0_13 = arith.constant 0 : index
      %18 = vector.load %arg3[%c0_12, %c0_13] : memref<16x64xf32, #tpu.memory_space<vmem>>, vector<16x64xf32>
      %cst_14 = arith.constant dense<0.000000e+00> : vector<200x64xf32>
      %19 = tpu.matmul %17, %18, %cst_14 {dimension_numbers = #tpu.dot_dimension_numbers<[1], [0], [0], [1], [0, 0, 1, 1], [], []>} : vector<200x16xf32>, vector<16x64xf32>, vector<200x64xf32> -> vector<200x64xf32>
      %20 = arith.truncf %19 : vector<200x64xf32> to vector<200x64xbf16>
      %c0_15 = arith.constant 0 : index
      %c0_16 = arith.constant 0 : index
      %21 = vector.load %arg7[%c0_15, %c0_16] : memref<200x64xbf16, #tpu.memory_space<vmem>>, vector<200x64xbf16>
      tpu.vector_store %arg7[%c0_15, %c0_16], %20 {strides = array<i32>} : memref<200x64xbf16, #tpu.memory_space<vmem>>, vector<200x64xbf16>,
    } else {
    }
    %c0 = arith.constant 0 : index
    %c0_1 = arith.constant 0 : index
    %3 = vector.load %arg4[%c0, %c0_1] : memref<128x200xf32, #tpu.memory_space<vmem>>, vector<128x200xf32>
    %4 = arith.truncf %3 : vector<128x200xf32> to vector<128x200xbf16>
    %c0_2 = arith.constant 0 : index
    %c0_3 = arith.constant 0 : index
    %5 = vector.load %arg7[%c0_2, %c0_3] : memref<200x64xbf16, #tpu.memory_space<vmem>>, vector<200x64xbf16>
    %cst = arith.constant dense<0.000000e+00> : vector<128x64xf32>
    %6 = tpu.matmul %4, %5, %cst {dimension_numbers = #tpu.dot_dimension_numbers<[1], [0], [0], [1], [0, 0, 1, 1], [], []>} : vector<128x200xbf16>, vector<200x64xbf16>, vector<128x64xf32> -> vector<128x64xf32>
    %c0_4 = arith.constant 0 : index
    %c0_5 = arith.constant 0 : index
    %7 = vector.load %arg5[%c0_4, %c0_5] : memref<1x64xf32, #tpu.memory_space<vmem>>, vector<1x64xf32>
    %8 = vector.broadcast %7 : vector<1x64xf32> to vector<128x64xf32>
    %9 = arith.addf %6, %8 : vector<128x64xf32>
    %c0_6 = arith.constant 0 : index
    %10 = memref.load %arg1[%c0_6] : memref<1xf32, #tpu.memory_space<smem>>
    %cst_7 = arith.constant 0.000000e+00 : f32
    %11 = vector.broadcast %cst_7 : f32 to vector<128x64xf32>
    %12 = arith.cmpf ogt, %9, %11 : vector<128x64xf32>
    %13 = vector.broadcast %10 : f32 to vector<128x64xf32>
    %14 = arith.mulf %13, %9 : vector<128x64xf32>
    %15 = arith.select %12, %9, %14 : vector<128x64xi1>, vector<128x64xf32>
    %c0_8 = arith.constant 0 : index
    %c0_9 = arith.constant 0 : index
    %16 = vector.load %arg6[%c0_8, %c0_9] : memref<128x64xf32, #tpu.memory_space<vmem>>, vector<128x64xf32>
    tpu.vector_store %arg6[%c0_8, %c0_9], %15 {strides = array<i32>} : memref<128x64xf32, #tpu.memory_space<vmem>>, vector<128x64xf32>,
    return
  }
  func.func @transform_0(%arg0: i32) -> i32 {
    %c0_i32 = arith.constant 0 : i32
    %c0_i32_0 = arith.constant 0 : i32
    return %c0_i32 : i32
  }
  func.func @transform_1(%arg0: i32) -> (i32, i32) {
    %c0_i32 = arith.constant 0 : i32
    %c0_i32_0 = arith.constant 0 : i32
    %c0_i32_1 = arith.constant 0 : i32
    return %c0_i32, %c0_i32_0 : i32, i32
  }
  func.func @transform_2(%arg0: i32) -> (i32, i32) {
    %c0_i32 = arith.constant 0 : i32
    %c0_i32_0 = arith.constant 0 : i32
    %c0_i32_1 = arith.constant 0 : i32
    return %c0_i32, %c0_i32_0 : i32, i32
  }
  func.func @transform_3(%arg0: i32) -> (i32, i32) {
    %c0_i32 = arith.constant 0 : i32
    %c0_i32_0 = arith.constant 0 : i32
    return %arg0, %c0_i32 : i32, i32
  }
  func.func @transform_4(%arg0: i32) -> (i32, i32) {
    %c0_i32 = arith.constant 0 : i32
    %c0_i32_0 = arith.constant 0 : i32
    %c0_i32_1 = arith.constant 0 : i32
    return %c0_i32, %c0_i32_0 : i32, i32
  }
  func.func @transform_5(%arg0: i32) -> (i32, i32) {
    %c0_i32 = arith.constant 0 : i32
    %c0_i32_0 = arith.constant 0 : i32
    return %arg0, %c0_i32 : i32, i32
  }
}

</mosaic_0001>

<bundles_post_ra>
// kernel: tpu_custom_call.1
= control target key start
LH: loop header
LB: loop body
LE: loop exit
PB: predicated region body
PF: predicated region fallthrough
CT: control target
= control target key end

     0   :  { %s2029_s0 = inlined_call_operand.<no memory space> [shape: f32[1], index: 0, kind: input, shape index: {}]   ;;  %s2030_s1 = inlined_call_operand.vmem [shape: f32[200,16], index: 1, kind: input, shape index: {}]   ;;  %s2031_s2 = inlined_call_operand.vmem [shape: f32[16,64], index: 2, kind: input, shape index: {}]   ;;  %s2032_s3 = inlined_call_operand.hbm [shape: f32[200,200], index: 3, kind: input, shape index: {}]   ;;  %s2033_s4 = inlined_call_operand.vmem [shape: f32[1,64], index: 4, kind: input, shape index: {}]   ;;  %s2034_s5 = inlined_call_operand.vmem [shape: f32[200,64], index: 5, kind: output, shape index: {}]  }
   0x1   :  { %10 = sst [smem:[#allocation3]] %s2029_s0 }
   0x2   :  { %11 = vsyncpa [#allocation5], 0 }
   0x3   :  { %13 = vsyncpa [#allocation5 + $0x1], 0  ;;  %s1572_s20 = smov 0   ;;  %s1574_s21 = smov 0  }
   0x4   :  { %s1576_s22 = smov 0   ;;  %s1578_s23 = smov 0  }
   0x5 LB: > { %s1591_s0 = sadd.s32 4294967295, %s1502_s23   ;;  %s1594_s24 = sadd.s32 1, %s1502_s23   ;;  %s1502_s23 = sphi %s1578_s23, %s2046_s23   ;;  %s1498_s22 = sphi %s1576_s22, %s2045_s22   ;;  %s1494_s21 = sphi %s1574_s21, %s2044_s21   ;;  %s1490_s20 = sphi %s1572_s20, %s2043_s20  }
   0x6   : > { %s86_s25 = ssub.s32 %s1502_s23, %s1594_s24  ;;  %s89_s26 = sadd.s32 1, %s1498_s22 }
   0x7   : > { %p87_p0 = scmp.eq.s32.totalorder %s86_s25, 0  ;;  %p96_p1 = scmp.ne.s32.totalorder %s1498_s22, %s1494_s21 }
   0x8   : > { %p97_p2 = scmp.eq.s32.totalorder %s1502_s23, 0  ;;  %p102_p3 = scmp.ne.s32.totalorder %s1494_s21, %s1490_s20 }
   0x9   : > { %s1604_s27 = scalar_select %p87_p0, %s1498_s22, %s89_s26  }
   0xa   : > { %p98_p4 = por %p97_p2, %p96_p1  ;;  %p103_p5 = scmp.eq.s32.totalorder %s1591_s0, 0 }
   0xb   : > { %p147_p6 = scmp.eq.s32.totalorder %s1591_s0, 1  ;;  %p1148_p9 = scmp.ge.s32.totalorder %s1502_s23, 2 }
   0xc   : > { %p1608_p7 = por %p103_p5, %p102_p3 }
   0xd   : > { %p1612_p8 = por %p147_p6, %p96_p1  ;;  %181 = sbr.rel (%p1148_p9) target bundleno = 54 (0x36), region = 32 }
  0x12   : > { %184 = sbr.rel (!%p98_p4) target bundleno = 54 (0x36), region = 36  ;;  %s185_s30 = sand.u32 (%p98_p4), 1, %s1498_s22  }
  0x13   : > { %s1150_s6 = sshll.u32 (%p98_p4), %s1502_s23, 4  ;;  %s1149_s7 = sshll.u32 (%p98_p4), %s185_s30, 8 }
  0x14   : > { %s191_s8 = ssub.s32 (%p98_p4), 25, %s1150_s6  ;;  %s1622_s12 = scalar_lea.sflag (%p98_p4), [#allocation5], %s185_s30 }
  0x15   : > { %p192_p10 = scmp.lt.s32.totalorder (%p98_p4), %s191_s8, 16  ;;  %s189_s13 = scalar_lea.vmem (%p98_p4), [#allocation4], %s1149_s7 }
  0x17   : > { %s2048_s8 = smov (!%p192_p10, %s191_s8), 16 }
  0x18   : > { %s1260_s9 = sshll.u32 %s2048_s8, 4 }
  0x19   : > { %s196_s10 = ssub.s32 256, %s1260_s9 }
  0x1a   : > { %s197_s11 = sshll.u32 %s196_s10, 4 }
  0x1b   : > { %198 = vsyncadd %s1622_s12, %s197_s11  ;;  %p1625_p11 = scmp.ne.s32.totalorder %s1260_s9, 0  ;;  %s1262_s15 = sshll.u32 %s1502_s23, 8 }
  0x1c   : > { %s202_s18 = scalar_lea.hbm %s2032_s3, %s1262_s15  ;;  %s1633_s19 = sshll.u32 %s189_s13, 4  ;;  %s207_s19 = int_to_ptr.vmem [resolvable:$true] %s1633_s19 }
  0x1d   : > { %s204_s20 = sshll.u32 %s202_s18, 4  ;;  %s1157_s25 = sshll.u32 %s2048_s8, 8  ;;  %s1636_s20 = int_to_ptr.hbm [resolvable:$true] %s204_s20 }
  0x1e   : > { %s1397_s26 = sshra.s32 %s1636_s20, 4  ;;  %s1399_s30 = sshrl.u32 %s1157_s25, 4  ;;  %s1398_s26 = int_to_ptr.hbm [resolvable:$true] %s1397_s26 }
  0x1f   : > { %s1404_s6 = scalar_lea.hbm %s1398_s26, %s1399_s30  ;;  %s1408_s10 = scalar_lea.hbm %s2032_s3, 400 }
  0x20   : > { %p1405_p12 = scmp.ne.s32.totalorder %s1398_s26, %s1404_s6  ;;  %p1409_p1 = scmp.lt.s32.totalorder %s1398_s26, %s2032_s3 }
  0x21   : > { %p1410_p2 = scmp.lt.s32.totalorder %s1408_s10, %s1404_s6 }
  0x22   : > { %p1406_p13 = pnand %p1405_p12, %p1625_p11 }
  0x23   : > { %p1411_p3 = por %p1410_p2, %p1409_p1 }
  0x24   : > { %p1407_p0 = pneg %p1406_p13 }
  0x26   : > { %p1412_p4 = pnand %p1411_p3, %p1407_p0 }
  0x28   : > { %1415 = shalt.err (!%p1412_p4)
}
  0x29   : > { %s1416_s15 = sshra.s32 %s207_s19, 4  ;;  %s1536_s17 = smov [#allocation4]   ;;  %s1417_s15 = int_to_ptr.vmem [resolvable:$true] %s1416_s15 }
  0x2a   : > { %s1423_s16 = scalar_lea.vmem %s1417_s15, %s1399_s30  ;;  %s1427_s18 = scalar_lea.vmem %s1536_s17, 512 }
  0x2b   : > { %p1424_p5 = scmp.ne.s32.totalorder %s1417_s15, %s1423_s16  ;;  %p1429_p10 = scmp.lt.s32.totalorder %s1427_s18, %s1423_s16 }
  0x2d   : > { %p1425_p6 = pnand %p1424_p5, %p1625_p11 }
  0x2f   : > { %p1426_p9 = pneg %p1425_p6 }
  0x31   : > { %p1431_p12 = pnand %p1429_p10, %p1426_p9 }
  0x33   : > { %1434 = shalt.err (!%p1431_p12)
}
  0x34   : > { %s1537_s26 = smov 256   ;;  %s1538_s6 = smov 16  }
  0x35   : > { %212 = dma.hbm_to_vmem [thread:$0]  (%p1625_p11), %s1636_s20, %s1157_s25, %s207_s19, %s1622_s12, %s1537_s26, %s1537_s26, %s1538_s6  }
  0x36 PF: > { %p1158_p13 = scmp.ge.s32.totalorder %s1502_s23, 1  ;;  %p214_p0 = scmp.lt.s32.totalorder %s1502_s23, 3 }
  0x38   : > { %p215_p1 = pnand %p1158_p13, %p214_p0 }
  0x39   : > { %s220_s30 = sand.u32 (!%p215_p1), 1, %s1494_s21  }
  0x3a   : > { %218 = sbr.rel (%p215_p1) target bundleno = 536 (0x218), region = 40  ;;  %s1159_s7 = sshll.u32 (!%p215_p1), %s220_s30, 8 }
  0x3b   : > { %s221_s9 = scalar_lea.sflag (!%p215_p1), [#allocation5], %s220_s30  ;;  %s1665_s10 = scalar_lea.vmem (!%p215_p1), [#allocation4], %s1159_s7 }
  0x3f   : > { %1485 = dma.done.wait (%p1608_p7), %s221_s9, 4096  }
  0x40   : > { %1487 = vsyncadd (%p1608_p7), %s221_s9, 4294963200  ;;  %s1160_s8 = sshll.u32 %s220_s30, 7  ;;  %p1161_p11 = scmp.ne.s32.totalorder %s1591_s0, 0 }
  0x41   : > { %s1671_s12 = scalar_lea.vmem [#allocation6], %s1160_s8  }
  0x42   : > { %266 = sbr.rel (%p1161_p11) target bundleno = 258 (0x102), region = 48 }
  0x47   : > { %v293_v0 = vld [vmem:[%s2031_s2 + $0x8] sm:$0xff]  ;;  %v292_v1 = vld [vmem:[%s2031_s2] sm:$0xff]  ;;  %vm294_vm0 = vcmask 130048   ;;  %v273_v3 = vld [vmem:[%s2030_s1 + $0x30] sm:$0xff]  ;;  %vm487_vm1 = vcmask 519168  }
  0x48   : > { %1279 = vmatpush.msra.mxu2 %v293_v0  ;;  %v280_v2 = vld [vmem:[%s2030_s1 + $0x68] sm:$0xff]  ;;  %1278 = vmatpush.msra.mxu1 %v293_v0  ;;  %v267_v4 = vld [vmem:[%s2030_s1] sm:$0xff]  ;;  %v281_v6 = vld [vmem:[%s2030_s1 + $0x70] sm:$0xff] }
  0x49   : > { %384 = vmatpush.msra.mxu0 %v293_v0  ;;  %1280 = vmatpush.msra.mxu3 %v293_v0  ;;  %v287_v5 = vld [vmem:[%s2030_s1 + $0xa0] sm:$0xff]  ;;  %v274_v7 = vld [vmem:[%s2030_s1 + $0x38] sm:$0xff]  ;;  %v268_v8 = vld [vmem:[%s2030_s1 + $0x8] sm:$0xff] }
  0x4a   : > { %1282 = vmatpush.msra.mxu2 %v292_v1  ;;  %1281 = vmatpush.msra.mxu1 %v292_v1  ;;  %v288_v9 = vld [vmem:[%s2030_s1 + $0xa8] sm:$0xff]  ;;  %v282_v10 = vld [vmem:[%s2030_s1 + $0x78] sm:$0xff]  ;;  %v275_v11 = vld [vmem:[%s2030_s1 + $0x40] sm:$0xff] }
  0x4b   : > { %1175 = vmatmul.msk.f32.vlgmr.msra.gmra.mxu2 %vm294_vm0, %v280_v2  ;;  %1168 = vmatmul.msk.f32.vlgmr.msra.gmra.mxu1 %vm294_vm0, %v273_v3  ;;  %v269_v12 = vld [vmem:[%s2030_s1 + $0x10] sm:$0xff]  ;;  %v283_v14 = vld [vmem:[%s2030_s1 + $0x80] sm:$0xff]  ;;  %v276_v15 = vld [vmem:[%s2030_s1 + $0x48] sm:$0xff] }
  0x4c   : > { %385 = vmatpush.msra.mxu0 %v292_v1  ;;  %1283 = vmatpush.msra.mxu3 %v292_v1  ;;  %v289_v13 = vld [vmem:[%s2030_s1 + $0xb0] sm:$0xff]  ;;  %v270_v16 = vld [vmem:[%s2030_s1 + $0x18] sm:$0xff]  ;;  %v284_v18 = vld [vmem:[%s2030_s1 + $0x88] sm:$0xff] }
  0x4d   : > { %1162 = vmatmul.msk.f32.vlgmr.msra.gmra.mxu0 %vm294_vm0, %v267_v4  ;;  %1182 = vmatmul.msk.f32.vlgmr.msra.gmra.mxu3 %vm294_vm0, %v287_v5  ;;  %v290_v17 = vld [vmem:[%s2030_s1 + $0xb8] sm:$0xff]  ;;  %v277_v19 = vld [vmem:[%s2030_s1 + $0x50] sm:$0xff]  ;;  %v271_v20 = vld [vmem:[%s2030_s1 + $0x20] sm:$0xff] }
  0x4e   : > { %v291_v21 = vld [vmem:[%s2030_s1 + $0xc0] sm:$0xff]  ;;  %v285_v22 = vld [vmem:[%s2030_s1 + $0x90] sm:$0xff]  ;;  %v278_v23 = vld [vmem:[%s2030_s1 + $0x58] sm:$0xff] }
  0x4f   : > { %v272_v24 = vld [vmem:[%s2030_s1 + $0x28] sm:$0xff]  ;;  %v286_v25 = vld [vmem:[%s2030_s1 + $0x98] sm:$0xff]  ;;  %v279_v26 = vld [vmem:[%s2030_s1 + $0x60] sm:$0xff] }
  0x53   : > { %1176 = vmatmul.msk.f32.gmra.mxu2 %vm294_vm0, %v281_v6  ;;  %1169 = vmatmul.msk.f32.gmra.mxu1 %vm294_vm0, %v274_v7 }
  0x55   : > { %1163 = vmatmul.msk.f32.gmra.mxu0 %vm294_vm0, %v268_v8  ;;  %1183 = vmatmul.msk.f32.gmra.mxu3 %vm294_vm0, %v288_v9 }
  0x5b   : > { %1177 = vmatmul.msk.f32.gmra.mxu2 %vm294_vm0, %v282_v10  ;;  %1170 = vmatmul.msk.f32.gmra.mxu1 %vm294_vm0, %v275_v11 }
  0x5d   : > { %1164 = vmatmul.msk.f32.gmra.mxu0 %vm294_vm0, %v269_v12  ;;  %1184 = vmatmul.msk.f32.gmra.mxu3 %vm294_vm0, %v289_v13 }
  0x63   : > { %1178 = vmatmul.msk.f32.gmra.mxu2 %vm294_vm0, %v283_v14  ;;  %1171 = vmatmul.msk.f32.gmra.mxu1 %vm294_vm0, %v276_v15 }
  0x65   : > { %1165 = vmatmul.msk.f32.gmra.mxu0 %vm294_vm0, %v270_v16  ;;  %1185 = vmatmul.msk.f32.gmra.mxu3 %vm294_vm0, %v290_v17 }
  0x6b   : > { %1179 = vmatmul.msk.f32.gmra.mxu2 %vm294_vm0, %v284_v18  ;;  %1172 = vmatmul.msk.f32.gmra.mxu1 %vm294_vm0, %v277_v19 }
  0x6d   : > { %1166 = vmatmul.msk.f32.gmra.mxu0 %vm294_vm0, %v271_v20  ;;  %1186 = vmatmul.msk.f32.gmra.mxu3 %vm294_vm0, %v291_v21 }
  0x73   : > { %1180 = vmatmul.msk.f32.gmra.mxu2 %vm294_vm0, %v285_v22  ;;  %1173 = vmatmul.msk.f32.gmra.mxu1 %vm294_vm0, %v278_v23 }
  0x75   : > { %1167 = vmatmul.msk.f32.gmra.mxu0 %vm294_vm0, %v272_v24 }
  0x7b   : > { %1181 = vmatmul.msk.f32.gmra.mxu2 %vm294_vm0, %v286_v25  ;;  %1174 = vmatmul.msk.f32.gmra.mxu1 %vm294_vm0, %v279_v26 }
  0xc8   : > { %v405_v27 = vpop.f32.mrf.mxu1 }
  0xc9   : > { %v468_v28 = vpack.c.bf16 %v405_v27, %v405_v27 }
  0xca   : > { %v387_v29 = vpop.f32.mrf.mxu0 }
  0xcb   : > { %494 = vst.msk [vmem:[#allocation2 + $0x18] sm:$0xf] %vm487_vm1, %v468_v28  ;;  %v462_v30 = vpack.c.bf16 %v387_v29, %v387_v29 }
  0xcd   : > { %488 = vst.msk [vmem:[#allocation2] sm:$0xf] %vm487_vm1, %v462_v30 }
  0xce   : > { %v426_v31 = vpop.f32.mrf.mxu2 }
  0xcf   : > { %v475_v32 = vpack.c.bf16 %v426_v31, %v426_v31 }
  0xd0   : > { %v408_v33 = vpop.f32.mrf.mxu1  ;;  %v447_v34 = vpop.f32.mrf.mxu3 }
  0xd1   : > { %501 = vst.msk [vmem:[#allocation2 + $0x34] sm:$0xf] %vm487_vm1, %v475_v32  ;;  %v469_v35 = vpack.c.bf16 %v408_v33, %v408_v33  ;;  %v482_v36 = vpack.c.bf16 %v447_v34, %v447_v34 }
  0xd2   : > { %v390_v37 = vpop.f32.mrf.mxu0 }
  0xd3   : > { %495 = vst.msk [vmem:[#allocation2 + $0x1c] sm:$0xf] %vm487_vm1, %v469_v35  ;;  %v463_v38 = vpack.c.bf16 %v390_v37, %v390_v37 }
  0xd4   : > { %508 = vst.msk [vmem:[#allocation2 + $0x50] sm:$0xf] %vm487_vm1, %v482_v36 }
  0xd5   : > { %489 = vst.msk [vmem:[#allocation2 + $0x4] sm:$0xf] %vm487_vm1, %v463_v38 }
  0xd6   : > { %v429_v39 = vpop.f32.mrf.mxu2 }
  0xd7   : > { %v476_v40 = vpack.c.bf16 %v429_v39, %v429_v39 }
  0xd8   : > { %v411_v41 = vpop.f32.mrf.mxu1  ;;  %v450_v42 = vpop.f32.mrf.mxu3 }
  0xd9   : > { %502 = vst.msk [vmem:[#allocation2 + $0x38] sm:$0xf] %vm487_vm1, %v476_v40  ;;  %v470_v43 = vpack.c.bf16 %v411_v41, %v411_v41  ;;  %v483_v44 = vpack.c.bf16 %v450_v42, %v450_v42 }
  0xda   : > { %v393_v45 = vpop.f32.mrf.mxu0 }
  0xdb   : > { %496 = vst.msk [vmem:[#allocation2 + $0x20] sm:$0xf] %vm487_vm1, %v470_v43  ;;  %v464_v46 = vpack.c.bf16 %v393_v45, %v393_v45 }
  0xdc   : > { %509 = vst.msk [vmem:[#allocation2 + $0x54] sm:$0xf] %vm487_vm1, %v483_v44 }
  0xdd   : > { %490 = vst.msk [vmem:[#allocation2 + $0x8] sm:$0xf] %vm487_vm1, %v464_v46 }
  0xde   : > { %v432_v47 = vpop.f32.mrf.mxu2 }
  0xdf   : > { %v477_v48 = vpack.c.bf16 %v432_v47, %v432_v47 }
  0xe0   : > { %v414_v49 = vpop.f32.mrf.mxu1  ;;  %v453_v50 = vpop.f32.mrf.mxu3 }
  0xe1   : > { %503 = vst.msk [vmem:[#allocation2 + $0x3c] sm:$0xf] %vm487_vm1, %v477_v48  ;;  %v471_v51 = vpack.c.bf16 %v414_v49, %v414_v49  ;;  %v484_v52 = vpack.c.bf16 %v453_v50, %v453_v50 }
  0xe2   : > { %v396_v53 = vpop.f32.mrf.mxu0 }
  0xe3   : > { %497 = vst.msk [vmem:[#allocation2 + $0x24] sm:$0xf] %vm487_vm1, %v471_v51  ;;  %v465_v54 = vpack.c.bf16 %v396_v53, %v396_v53 }
  0xe4   : > { %510 = vst.msk [vmem:[#allocation2 + $0x58] sm:$0xf] %vm487_vm1, %v484_v52 }
  0xe5   : > { %491 = vst.msk [vmem:[#allocation2 + $0xc] sm:$0xf] %vm487_vm1, %v465_v54 }
  0xe6   : > { %v435_v55 = vpop.f32.mrf.mxu2 }
  0xe7   : > { %v478_v56 = vpack.c.bf16 %v435_v55, %v435_v55 }
  0xe8   : > { %v417_v57 = vpop.f32.mrf.mxu1  ;;  %v456_v58 = vpop.f32.mrf.mxu3 }
  0xe9   : > { %504 = vst.msk [vmem:[#allocation2 + $0x40] sm:$0xf] %vm487_vm1, %v478_v56  ;;  %v472_v59 = vpack.c.bf16 %v417_v57, %v417_v57  ;;  %v485_v60 = vpack.c.bf16 %v456_v58, %v456_v58 }
  0xea   : > { %v399_v61 = vpop.f32.mrf.mxu0 }
  0xeb   : > { %498 = vst.msk [vmem:[#allocation2 + $0x28] sm:$0xf] %vm487_vm1, %v472_v59  ;;  %v466_v62 = vpack.c.bf16 %v399_v61, %v399_v61 }
  0xec   : > { %511 = vst.msk [vmem:[#allocation2 + $0x5c] sm:$0xf] %vm487_vm1, %v485_v60 }
  0xed   : > { %492 = vst.msk [vmem:[#allocation2 + $0x10] sm:$0xf] %vm487_vm1, %v466_v62 }
  0xee   : > { %v438_v63 = vpop.f32.mrf.mxu2 }
  0xef   : > { %v479_v0 = vpack.c.bf16 %v438_v63, %v438_v63 }
  0xf0   : > { %v420_v1 = vpop.f32.mrf.mxu1  ;;  %v459_v2 = vpop.f32.mrf.mxu3 }
  0xf1   : > { %505 = vst.msk [vmem:[#allocation2 + $0x44] sm:$0xf] %vm487_vm1, %v479_v0  ;;  %v473_v3 = vpack.c.bf16 %v420_v1, %v420_v1  ;;  %v486_v4 = vpack.c.bf16 %v459_v2, %v459_v2 }
  0xf2   : > { %v402_v5 = vpop.f32.mrf.mxu0 }
  0xf3   : > { %499 = vst.msk [vmem:[#allocation2 + $0x2c] sm:$0xf] %vm487_vm1, %v473_v3  ;;  %v467_v6 = vpack.c.bf16 %v402_v5, %v402_v5 }
  0xf4   : > { %512 = vst.msk [vmem:[#allocation2 + $0x60] sm:$0xf] %vm487_vm1, %v486_v4 }
  0xf5   : > { %493 = vst.msk [vmem:[#allocation2 + $0x14] sm:$0xf] %vm487_vm1, %v467_v6 }
  0xf6   : > { %v441_v7 = vpop.f32.mrf.mxu2 }
  0xf7   : > { %v480_v8 = vpack.c.bf16 %v441_v7, %v441_v7 }
  0xf8   : > { %v423_v9 = vpop.f32.mrf.mxu1 }
  0xf9   : > { %506 = vst.msk [vmem:[#allocation2 + $0x48] sm:$0xf] %vm487_vm1, %v480_v8  ;;  %v474_v10 = vpack.c.bf16 %v423_v9, %v423_v9 }
  0xfb   : > { %500 = vst.msk [vmem:[#allocation2 + $0x30] sm:$0xf] %vm487_vm1, %v474_v10 }
  0xfe   : > { %v444_v11 = vpop.f32.mrf.mxu2 }
  0xff   : > { %v481_v12 = vpack.c.bf16 %v444_v11, %v444_v11 }
 0x101   : > { %507 = vst.msk [vmem:[#allocation2 + $0x4c] sm:$0xf] %vm487_vm1, %v481_v12 }
 0x102 PF: > { %v1270_v13 = vld [vmem:[#allocation2 + $0x38] sm:$0xff]  ;;  %v585_v14 = vld [vmem:[#allocation2 + $0x60] sm:$0xf]  ;;  %vm690_vm2 = vcmask 1043456   ;;  %v1269_v16 = vld [vmem:[#allocation2 + $0x30] sm:$0xff]  ;;  %vm665_vm3 = vcmask 588800  }
 0x103   : > { %v639_v15 = vunpack.c.l.b16 %v585_v14  ;;  %694 = vmatpush.bf16.msra.mxu0 %v1270_v13  ;;  %1284 = vmatpush.bf16.msra.mxu2 %v1270_v13  ;;  %v1274_v19 = vld [vmem:[#allocation2 + $0x58] sm:$0xff]  ;;  %v1268_v20 = vld [vmem:[#allocation2 + $0x28] sm:$0xff]  ;;  %v1273_v21 = vld [vmem:[#allocation2 + $0x50] sm:$0xff]  ;;  %s792_s23 = sld [smem:[#allocation3]]  ;;  %vm842_vm5 = vcmask 523264   ;;  %s1275_s20 = sshll.u32 (%p1612_p8), %s1591_s0, 7 }
 0x104   : > { %v1267_v22 = vld [vmem:[#allocation2 + $0x20] sm:$0xff]  ;;  %v1266_v24 = vld [vmem:[#allocation2 + $0x18] sm:$0xff]  ;;  %v1265_v26 = vld [vmem:[#allocation2 + $0x10] sm:$0xff]  ;;  %s1929_s13 = scalar_lea.vmem (%p1612_p8), %s2034_s5, %s1275_s20  }
 0x105   : > { %v652_v17 = vpack.c.b16 %v639_v15, %v639_v15  ;;  %v1271_v25 = vld [vmem:[#allocation2 + $0x40] sm:$0xff]  ;;  %v514_v27 = vld [vmem:[%s1665_s10 + $0x8] sm:$0xff]  ;;  %v515_v36 = vld [vmem:[%s1665_s10 + $0x10] sm:$0xff] }
 0x106   : > { %v516_v28 = vld [vmem:[%s1665_s10 + $0x18] sm:$0xff]  ;;  %v534_v29 = vld [vmem:[%s1665_s10 + $0xa8] sm:$0xff]  ;;  %v513_v35 = vld [vmem:[%s1665_s10] sm:$0xff] }
 0x107   : > { %v692_v18 = vsel %vm690_vm2, %v652_v17, 0  ;;  %695 = vmatpush.bf16.msra.mxu0 %v1269_v16  ;;  %1285 = vmatpush.bf16.msra.mxu2 %v1269_v16  ;;  %v536_v30 = vld [vmem:[%s1665_s10 + $0xb8] sm:$0xff]  ;;  %v546_v31 = vpack.c.bf16 %v516_v28, %v514_v27  ;;  %v1264_v32 = vld [vmem:[#allocation2 + $0x8] sm:$0xff]  ;;  %v531_v38 = vld [vmem:[%s1665_s10 + $0x90] sm:$0xff]  ;;  %v545_v39 = vpack.c.bf16 %v515_v36, %v513_v35 }
 0x108   : > { %746 = vmatpush.bf16.msra.mxu1 %v692_v18  ;;  %1292 = vmatpush.bf16.msra.mxu3 %v692_v18  ;;  %v1272_v23 = vld [vmem:[#allocation2 + $0x48] sm:$0xff]  ;;  %v556_v33 = vpack.c.bf16 %v536_v30, %v534_v29  ;;  %v1263_v34 = vld [vmem:[#allocation2] sm:$0xff]  ;;  %v519_v48 = vld [vmem:[%s1665_s10 + $0x30] sm:$0xff] }
 0x109   : > { %v529_v37 = vld [vmem:[%s1665_s10 + $0x80] sm:$0xff]  ;;  %v518_v41 = vld [vmem:[%s1665_s10 + $0x28] sm:$0xff]  ;;  %v520_v42 = vld [vmem:[%s1665_s10 + $0x38] sm:$0xff]  ;;  %v1851_v18 = vstv %s792_s23 }
 0x10a   : > { %v553_v40 = vpack.c.bf16 %v531_v38, %v529_v37  ;;  %v538_v43 = vld [vmem:[%s1665_s10 + $0xc8] sm:$0xff]  ;;  %v540_v44 = vld [vmem:[%s1665_s10 + $0xd8] sm:$0xff]  ;;  %v548_v45 = vpack.c.bf16 %v520_v42, %v518_v41  ;;  %v517_v47 = vld [vmem:[%s1665_s10 + $0x20] sm:$0xff] }
 0x10b   : > { %696 = vmatpush.bf16.msra.mxu0 %v1268_v20  ;;  %1286 = vmatpush.bf16.msra.mxu2 %v1268_v20  ;;  %v558_v46 = vpack.c.bf16 %v540_v44, %v538_v43  ;;  %v533_v49 = vld [vmem:[%s1665_s10 + $0xa0] sm:$0xff]  ;;  %v535_v50 = vld [vmem:[%s1665_s10 + $0xb0] sm:$0xff]  ;;  %v547_v51 = vpack.c.bf16 %v519_v48, %v517_v47  ;;  %v522_v53 = vld [vmem:[%s1665_s10 + $0x48] sm:$0xff] }
 0x10c   : > { %747 = vmatpush.bf16.msra.mxu1 %v1274_v19  ;;  %1293 = vmatpush.bf16.msra.mxu3 %v1274_v19  ;;  %v555_v52 = vpack.c.bf16 %v535_v50, %v533_v49  ;;  %v524_v54 = vld [vmem:[%s1665_s10 + $0x58] sm:$0xff]  ;;  %v542_v55 = vld [vmem:[%s1665_s10 + $0xe8] sm:$0xff]  ;;  %v521_v59 = vld [vmem:[%s1665_s10 + $0x40] sm:$0xff] }
 0x10d   : > { %v544_v56 = vld [vmem:[%s1665_s10 + $0xf8] sm:$0xff]  ;;  %v550_v57 = vpack.c.bf16 %v524_v54, %v522_v53  ;;  %v523_v60 = vld [vmem:[%s1665_s10 + $0x50] sm:$0xff]  ;;  %v537_v61 = vld [vmem:[%s1665_s10 + $0xc0] sm:$0xff] }
 0x10e   : > { %v560_v58 = vpack.c.bf16 %v544_v56, %v542_v55  ;;  %v539_v62 = vld [vmem:[%s1665_s10 + $0xd0] sm:$0xff]  ;;  %v549_v63 = vpack.c.bf16 %v523_v60, %v521_v59  ;;  %v526_v1 = vld [vmem:[%s1665_s10 + $0x68] sm:$0xff]  ;;  %v528_v2 = vld [vmem:[%s1665_s10 + $0x78] sm:$0xff] }
 0x10f   : > { %697 = vmatpush.bf16.msra.mxu0 %v1267_v22  ;;  %1287 = vmatpush.bf16.msra.mxu2 %v1267_v22  ;;  %v557_v0 = vpack.c.bf16 %v539_v62, %v537_v61  ;;  %v552_v3 = vpack.c.bf16 %v528_v2, %v526_v1  ;;  %v525_v4 = vld [vmem:[%s1665_s10 + $0x60] sm:$0xff]  ;;  %v527_v5 = vld [vmem:[%s1665_s10 + $0x70] sm:$0xff]  ;;  %v530_v10 = vld [vmem:[%s1665_s10 + $0x88] sm:$0xff] }
 0x110   : > { %748 = vmatpush.bf16.msra.mxu1 %v1273_v21  ;;  %1294 = vmatpush.bf16.msra.mxu3 %v1273_v21  ;;  %v541_v6 = vld [vmem:[%s1665_s10 + $0xe0] sm:$0xff]  ;;  %v543_v7 = vld [vmem:[%s1665_s10 + $0xf0] sm:$0xff]  ;;  %v551_v8 = vpack.c.bf16 %v527_v5, %v525_v4  ;;  %v532_v11 = vld [vmem:[%s1665_s10 + $0x98] sm:$0xff]  ;;  %s1244_s10 = sshll.u32 (%p1612_p8), %s1591_s0, 4 }
 0x111   : > { %v559_v9 = vpack.c.bf16 %v543_v7, %v541_v6  ;;  %v554_v12 = vpack.c.bf16 %v532_v11, %v530_v10  ;;  %v1848_v14 = vld [vmem:[%s2033_s4] ss:$0 sm:$0xff]  ;;  %s867_s25 = ssub.s32 (%p1612_p8), 25, %s1244_s10 }
 0x112   : > { %p868_p7 = scmp.lt.s32.totalorder (%p1612_p8), %s867_s25, 16 }
 0x113   : > { %698 = vmatpush.bf16.msra.mxu0 %v1266_v24  ;;  %1288 = vmatpush.bf16.msra.mxu2 %v1266_v24 }
 0x114   : > { %749 = vmatpush.bf16.msra.mxu1 %v1272_v23  ;;  %1295 = vmatpush.bf16.msra.mxu3 %v1272_v23 }
 0x117   : > { %699 = vmatpush.bf16.msra.mxu0 %v1265_v26  ;;  %1289 = vmatpush.bf16.msra.mxu2 %v1265_v26 }
 0x118   : > { %750 = vmatpush.bf16.msra.mxu1 %v1271_v25  ;;  %1296 = vmatpush.bf16.msra.mxu3 %v1271_v25 }
 0x11b   : > { %1235 = vmatmul.msk.bf16.vlgmr.msra.gmra.mxu1 %vm665_vm3, %v546_v31  ;;  %700 = vmatpush.bf16.msra.mxu0 %v1264_v32 }
 0x11c   : > { %1240 = vmatmul.msk.bf16.vlgmr.msra.gmra.mxu3 %vm665_vm3, %v556_v33  ;;  %1290 = vmatpush.bf16.msra.mxu2 %v1264_v32 }
 0x11f   : > { %701 = vmatpush.bf16.msra.mxu0 %v1263_v34 }
 0x120   : > { %1291 = vmatpush.bf16.msra.mxu2 %v1263_v34 }
 0x122   : > { %702 = vmatmul.bf16.vlgmr.msra.gmra.mxu0 %v545_v39 }
 0x123   : > { %722 = vmatmul.bf16.vlgmr.msra.gmra.mxu2 %v553_v40 }
 0x12b   : > { %1236 = vmatmul.msk.bf16.gmra.mxu1 %vm665_vm3, %v548_v45 }
 0x12c   : > { %1241 = vmatmul.msk.bf16.gmra.mxu3 %vm665_vm3, %v558_v46 }
 0x132   : > { %707 = vmatmul.bf16.gmra.mxu0 %v547_v51 }
 0x133   : > { %727 = vmatmul.bf16.gmra.mxu2 %v555_v52 }
 0x13b   : > { %1237 = vmatmul.msk.bf16.gmra.mxu1 %vm665_vm3, %v550_v57 }
 0x13c   : > { %1242 = vmatmul.msk.bf16.gmra.mxu3 %vm665_vm3, %v560_v58 }
 0x142   : > { %712 = vmatmul.bf16.gmra.mxu0 %v549_v63 }
 0x143   : > { %732 = vmatmul.bf16.gmra.mxu2 %v557_v0 }
 0x14b   : > { %1238 = vmatmul.msk.bf16.gmra.mxu1 %vm665_vm3, %v552_v3 }
 0x152   : > { %717 = vmatmul.bf16.gmra.mxu0 %v551_v8 }
 0x153   : > { %737 = vmatmul.bf16.gmra.mxu2 %v559_v9 }
 0x15b   : > { %1239 = vmatmul.msk.bf16.gmra.mxu1 %vm665_vm3, %v554_v12 }
 0x198   : > { %v752_v13 = vpop.f32.mrf.mxu1 }
 0x19f   : > { %v703_v16 = vpop.f32.mrf.mxu0  ;;  %v777_v30 = vpop.f32.mrf.mxu3 }
 0x1a0   : > { %v754_v15 = vpop.f32.mrf.mxu1  ;;  %v704_v17 = vadd.f32 %v1848_v14, %v703_v16 }
 0x1a2   : > { %v753_v19 = vadd.f32 %v752_v13, %v704_v17 }
 0x1a4   : > { %vm793_vm4 = vcmp.gt.f32.partialorder %v753_v19, 0.0  ;;  %v810_v20 = vmul.f32 %v1851_v18, %v753_v19 }
 0x1a6   : > { %v826_v21 = vsel %vm793_vm4, %v753_v19, %v810_v20  ;;  %v1854_v22 = vpop.f32.mrf.mxu2 }
 0x1a7   : > { %843 = vst.msk [vmem:[%s1671_s12] sm:$0xff] %vm842_vm5, %v826_v21  ;;  %v705_v24 = vpop.f32.mrf.mxu0  ;;  %v779_v42 = vpop.f32.mrf.mxu3  ;;  %v724_v21 = vadd.f32 %v1848_v14, %v1854_v22 }
 0x1a8   : > { %v757_v23 = vpop.f32.mrf.mxu1  ;;  %v706_v25 = vadd.f32 %v1848_v14, %v705_v24 }
 0x1aa   : > { %v755_v26 = vadd.f32 %v754_v15, %v706_v25 }
 0x1ac   : > { %vm794_vm6 = vcmp.gt.f32.partialorder %v755_v26, 0.0  ;;  %v811_v27 = vmul.f32 %v1851_v18, %v755_v26 }
 0x1ae   : > { %v827_v28 = vsel %vm794_vm6, %v755_v26, %v811_v27  ;;  %v1860_v29 = vpop.f32.mrf.mxu2 }
 0x1af   : > { %844 = vst.msk [vmem:[%s1671_s12 + $0x8] sm:$0xff] %vm842_vm5, %v827_v28  ;;  %v708_v32 = vpop.f32.mrf.mxu0  ;;  %v782_v56 = vpop.f32.mrf.mxu3 }
 0x1b0   : > { %v759_v31 = vpop.f32.mrf.mxu1  ;;  %v709_v33 = vadd.f32 %v1848_v14, %v708_v32 }
 0x1b2   : > { %v758_v34 = vadd.f32 %v757_v23, %v709_v33 }
 0x1b4   : > { %vm795_vm7 = vcmp.gt.f32.partialorder %v758_v34, 0.0  ;;  %v812_v35 = vmul.f32 %v1851_v18, %v758_v34 }
 0x1b6   : > { %v828_v36 = vsel %vm795_vm7, %v758_v34, %v812_v35  ;;  %v728_v37 = vpop.f32.mrf.mxu2 }
 0x1b7   : > { %845 = vst.msk [vmem:[%s1671_s12 + $0x10] sm:$0xff] %vm842_vm5, %v828_v36  ;;  %v729_v38 = vadd.f32 %v1848_v14, %v728_v37  ;;  %v710_v40 = vpop.f32.mrf.mxu0  ;;  %v784_v6 = vpop.f32.mrf.mxu3 }
 0x1b8   : > { %v762_v39 = vpop.f32.mrf.mxu1  ;;  %v711_v41 = vadd.f32 %v1848_v14, %v710_v40 }
 0x1b9   : > { %v778_v43 = vadd.f32 %v777_v30, %v729_v38  ;;  %v726_v38 = vadd.f32 %v1848_v14, %v1860_v29 }
 0x1ba   : > { %v760_v44 = vadd.f32 %v759_v31, %v711_v41 }
 0x1bb   : > { %vm803_vm8 = vcmp.gt.f32.partialorder %v778_v43, 0.0  ;;  %v820_v45 = vmul.f32 %v1851_v18, %v778_v43 }
 0x1bc   : > { %vm796_vm9 = vcmp.gt.f32.partialorder %v760_v44, 0.0  ;;  %v813_v46 = vmul.f32 %v1851_v18, %v760_v44 }
 0x1bd   : > { %v836_v47 = vsel %vm803_vm8, %v778_v43, %v820_v45 }
 0x1be   : > { %853 = vst.msk [vmem:[%s1671_s12 + $0x50] sm:$0xff] %vm842_vm5, %v836_v47  ;;  %v829_v48 = vsel %vm796_vm9, %v760_v44, %v813_v46  ;;  %v730_v49 = vpop.f32.mrf.mxu2 }
 0x1bf   : > { %846 = vst.msk [vmem:[%s1671_s12 + $0x18] sm:$0xff] %vm842_vm5, %v829_v48  ;;  %v731_v50 = vadd.f32 %v1848_v14, %v730_v49  ;;  %v713_v52 = vpop.f32.mrf.mxu0  ;;  %v787_v24 = vpop.f32.mrf.mxu3 }
 0x1c0   : > { %v764_v51 = vpop.f32.mrf.mxu1  ;;  %v714_v53 = vadd.f32 %v1848_v14, %v713_v52 }
 0x1c1   : > { %v780_v54 = vadd.f32 %v779_v42, %v731_v50 }
 0x1c2   : > { %v763_v55 = vadd.f32 %v762_v39, %v714_v53 }
 0x1c3   : > { %vm804_vm10 = vcmp.gt.f32.partialorder %v780_v54, 0.0  ;;  %v821_v57 = vmul.f32 %v1851_v18, %v780_v54 }
 0x1c4   : > { %vm797_vm11 = vcmp.gt.f32.partialorder %v763_v55, 0.0  ;;  %v814_v58 = vmul.f32 %v1851_v18, %v763_v55 }
 0x1c5   : > { %v837_v59 = vsel %vm804_vm10, %v780_v54, %v821_v57 }
 0x1c6   : > { %854 = vst.msk [vmem:[%s1671_s12 + $0x58] sm:$0xff] %vm842_vm5, %v837_v59  ;;  %v830_v60 = vsel %vm797_vm11, %v763_v55, %v814_v58  ;;  %v733_v61 = vpop.f32.mrf.mxu2 }
 0x1c7   : > { %847 = vst.msk [vmem:[%s1671_s12 + $0x20] sm:$0xff] %vm842_vm5, %v830_v60  ;;  %v734_v62 = vadd.f32 %v1848_v14, %v733_v61  ;;  %v715_v0 = vpop.f32.mrf.mxu0  ;;  %v789_v43 = vpop.f32.mrf.mxu3 }
 0x1c8   : > { %v767_v63 = vpop.f32.mrf.mxu1  ;;  %v716_v1 = vadd.f32 %v1848_v14, %v715_v0 }
 0x1c9   : > { %v783_v2 = vadd.f32 %v782_v56, %v734_v62 }
 0x1ca   : > { %v765_v3 = vadd.f32 %v764_v51, %v716_v1 }
 0x1cb   : > { %vm805_vm12 = vcmp.gt.f32.partialorder %v783_v2, 0.0  ;;  %v822_v4 = vmul.f32 %v1851_v18, %v783_v2 }
 0x1cc   : > { %vm798_vm13 = vcmp.gt.f32.partialorder %v765_v3, 0.0  ;;  %v815_v5 = vmul.f32 %v1851_v18, %v765_v3 }
 0x1cd   : > { %v838_v7 = vsel %vm805_vm12, %v783_v2, %v822_v4 }
 0x1ce   : > { %855 = vst.msk [vmem:[%s1671_s12 + $0x60] sm:$0xff] %vm842_vm5, %v838_v7  ;;  %v831_v8 = vsel %vm798_vm13, %v765_v3, %v815_v5  ;;  %v735_v9 = vpop.f32.mrf.mxu2 }
 0x1cf   : > { %848 = vst.msk [vmem:[%s1671_s12 + $0x28] sm:$0xff] %vm842_vm5, %v831_v8  ;;  %v736_v10 = vadd.f32 %v1848_v14, %v735_v9  ;;  %v718_v12 = vpop.f32.mrf.mxu0 }
 0x1d0   : > { %v769_v11 = vpop.f32.mrf.mxu1  ;;  %v719_v13 = vadd.f32 %v1848_v14, %v718_v12 }
 0x1d1   : > { %v785_v15 = vadd.f32 %v784_v6, %v736_v10 }
 0x1d2   : > { %v768_v16 = vadd.f32 %v767_v63, %v719_v13 }
 0x1d3   : > { %vm806_vm14 = vcmp.gt.f32.partialorder %v785_v15, 0.0  ;;  %v823_v17 = vmul.f32 %v1851_v18, %v785_v15 }
 0x1d4   : > { %vm799_vm15 = vcmp.gt.f32.partialorder %v768_v16, 0.0  ;;  %v816_v19 = vmul.f32 %v1851_v18, %v768_v16 }
 0x1d5   : > { %v839_v20 = vsel %vm806_vm14, %v785_v15, %v823_v17 }
 0x1d6   : > { %856 = vst.msk [vmem:[%s1671_s12 + $0x68] sm:$0xff] %vm842_vm5, %v839_v20  ;;  %v832_v23 = vsel %vm799_vm15, %v768_v16, %v816_v19  ;;  %v738_v25 = vpop.f32.mrf.mxu2 }
 0x1d7   : > { %849 = vst.msk [vmem:[%s1671_s12 + $0x30] sm:$0xff] %vm842_vm5, %v832_v23  ;;  %v739_v26 = vadd.f32 %v1848_v14, %v738_v25  ;;  %v720_v28 = vpop.f32.mrf.mxu0 }
 0x1d8   : > { %v772_v27 = vpop.f32.mrf.mxu1  ;;  %v721_v31 = vadd.f32 %v1848_v14, %v720_v28 }
 0x1d9   : > { %v773_v30 = vadd.f32 %v772_v27, %v724_v21  ;;  %v788_v32 = vadd.f32 %v787_v24, %v739_v26 }
 0x1da   : > { %v770_v33 = vadd.f32 %v769_v11, %v721_v31 }
 0x1db   : > { %vm801_vm0 = vcmp.gt.f32.partialorder %v773_v30, 0.0  ;;  %v818_v22 = vmul.f32 %v1851_v18, %v773_v30  ;;  %vm807_vm1 = vcmp.gt.f32.partialorder %v788_v32, 0.0  ;;  %v824_v34 = vmul.f32 %v1851_v18, %v788_v32 }
 0x1dc   : > { %vm800_vm2 = vcmp.gt.f32.partialorder %v770_v33, 0.0  ;;  %v817_v36 = vmul.f32 %v1851_v18, %v770_v33 }
 0x1dd   : > { %v834_v35 = vsel %vm801_vm0, %v773_v30, %v818_v22  ;;  %v840_v37 = vsel %vm807_vm1, %v788_v32, %v824_v34 }
 0x1de   : > { %851 = vst.msk [vmem:[%s1671_s12 + $0x40] sm:$0xff] %vm842_vm5, %v834_v35  ;;  %v833_v39 = vsel %vm800_vm2, %v770_v33, %v817_v36  ;;  %v740_v40 = vpop.f32.mrf.mxu2 }
 0x1df   : > { %857 = vst.msk [vmem:[%s1671_s12 + $0x70] sm:$0xff] %vm842_vm5, %v840_v37  ;;  %v741_v41 = vadd.f32 %v1848_v14, %v740_v40 }
 0x1e0   : > { %850 = vst.msk [vmem:[%s1671_s12 + $0x38] sm:$0xff] %vm842_vm5, %v833_v39  ;;  %v774_v42 = vpop.f32.mrf.mxu1 }
 0x1e1   : > { %v775_v44 = vadd.f32 %v774_v42, %v726_v38  ;;  %v790_v45 = vadd.f32 %v789_v43, %v741_v41 }
 0x1e3   : > { %vm802_vm3 = vcmp.gt.f32.partialorder %v775_v44, 0.0  ;;  %v819_v46 = vmul.f32 %v1851_v18, %v775_v44  ;;  %vm808_vm4 = vcmp.gt.f32.partialorder %v790_v45, 0.0  ;;  %v825_v29 = vmul.f32 %v1851_v18, %v790_v45  ;;  %865 = sbr.rel (!%p1612_p8) target bundleno = 536 (0x218), region = 52 }
 0x1e5   : > { %v835_v47 = vsel %vm802_vm3, %v775_v44, %v819_v46  ;;  %v841_v48 = vsel %vm808_vm4, %v790_v45, %v825_v29 }
 0x1e6   : > { %852 = vst.msk [vmem:[%s1671_s12 + $0x48] sm:$0xff] %vm842_vm5, %v835_v47 }
 0x1e7   : > { %858 = vst.msk [vmem:[%s1671_s12 + $0x78] sm:$0xff] %vm842_vm5, %v841_v48 }
 0x1e8   : > { %s2050_s25 = smov (!%p868_p7, %s867_s25), 16 }
 0x1e9   : > { %s1245_s15 = sshll.u32 %s2050_s25, 3 }
 0x1ea   : > { %p1248_p2 = scmp.eq.s32.totalorder %s1245_s15, 0 }
 0x1eb   : > { %s1935_s29 = sshrl.u32 (!%p1248_p2), %s2050_s25, 4 }
 0x1ec   : > { %876 = sbr.rel (%p1248_p2) target bundleno = 536 (0x218), region = 56  ;;  %p1249_p8 = scmp.le.s32.totalorder (!%p1248_p2), %s1935_s29, 0 }
 0x1f1   : > { %1099 = sbr.rel (%p1249_p8) target bundleno = 519 (0x207), region = 138  ;;  %s2038_s0 = smov (!%p1249_p8), %s1929_s13 }
 0x1f2   : > { %s2039_s16 = smov (!%p1249_p8), %s1671_s12  ;;  %s1944_s17 = smov (!%p1249_p8), 0  }
 0x1f3   : > { %s1946_s18 = smov (!%p1249_p8), 0  }
 0x1f6 LB: >> { %v969_v14 = vld [vmem:[%s1510_s16] sm:$0xff]  ;;  %v971_v18 = vld [vmem:[%s1510_s16 + $0x8] sm:$0xff]  ;;  %v973_v49 = vld [vmem:[%s1510_s16 + $0x10] sm:$0xff]  ;;  %s1001_s26 = sadd.s32 1, %s1514_s17  ;;  %s963_s18 = sadd.s32 1, %s1518_s18   ;;  %s1518_s18 = sphi %s1946_s18, %s963_s18   ;;  %s1514_s17 = sphi %s1944_s17, %s2042_s17   ;;  %s1510_s16 = sphi %s2039_s16, %s2041_s16   ;;  %s1506_s0 = sphi %s2038_s0, %s2040_s0  }
 0x1f7   : >> { %970 = vst [vmem:[%s1506_s0] sm:$0xff] %v969_v14  ;;  %v975_v50 = vld [vmem:[%s1510_s16 + $0x18] sm:$0xff]  ;;  %p1002_p3 = scmp.ge.s32.totalorder %s1001_s26, %s1935_s29  ;;  %v977_v51 = vld [vmem:[%s1510_s16 + $0x20] sm:$0xff]  ;;  %v979_v52 = vld [vmem:[%s1510_s16 + $0x28] sm:$0xff]  ;;  %p962_p4 = scmp.ge.s32.totalorder %s963_s18, %s1935_s29 }
 0x1f8   : >> { %972 = vst [vmem:[%s1506_s0 + $0x8] sm:$0xff] %v971_v18  ;;  %v981_v53 = vld [vmem:[%s1510_s16 + $0x30] sm:$0xff]  ;;  %v983_v54 = vld [vmem:[%s1510_s16 + $0x38] sm:$0xff]  ;;  %v985_v55 = vld [vmem:[%s1510_s16 + $0x40] sm:$0xff] }
 0x1f9   : >> { %974 = vst [vmem:[%s1506_s0 + $0x10] sm:$0xff] %v973_v49  ;;  %s2052_s26 = smov (%p1002_p3, %s1001_s26), 0  ;;  %v987_v56 = vld [vmem:[%s1510_s16 + $0x48] sm:$0xff]  ;;  %v989_v57 = vld [vmem:[%s1510_s16 + $0x50] sm:$0xff]  ;;  %v991_v58 = vld [vmem:[%s1510_s16 + $0x58] sm:$0xff] }
 0x1fa   : >> { %976 = vst [vmem:[%s1506_s0 + $0x18] sm:$0xff] %v975_v50  ;;  %s1250_s6 = sshll.u32 %s2052_s26, 7  ;;  %v993_v59 = vld [vmem:[%s1510_s16 + $0x60] sm:$0xff]  ;;  %v995_v60 = vld [vmem:[%s1510_s16 + $0x68] sm:$0xff]  ;;  %v997_v61 = vld [vmem:[%s1510_s16 + $0x70] sm:$0xff]  ;;  %s2042_s17 = smov %s2052_s26 }
 0x1fb   : >> { %978 = vst [vmem:[%s1506_s0 + $0x20] sm:$0xff] %v977_v51  ;;  %s1006_s30 = scalar_lea.vmem %s1671_s12, %s1250_s6 [#allocation6]   ;;  %s1007_s7 = scalar_lea.vmem %s1929_s13, %s1250_s6   ;;  %v999_v62 = vld [vmem:[%s1510_s16 + $0x78] sm:$0xff] }
 0x1fc   : >> { %980 = vst [vmem:[%s1506_s0 + $0x28] sm:$0xff] %v979_v52  ;;  %s2041_s16 = smov %s1006_s30 }
 0x1fd   : >> { %982 = vst [vmem:[%s1506_s0 + $0x30] sm:$0xff] %v981_v53 }
 0x1fe   : >> { %984 = vst [vmem:[%s1506_s0 + $0x38] sm:$0xff] %v983_v54 }
 0x1ff   : >> { %986 = vst [vmem:[%s1506_s0 + $0x40] sm:$0xff] %v985_v55 }
 0x200   : >> { %988 = vst [vmem:[%s1506_s0 + $0x48] sm:$0xff] %v987_v56 }
 0x201   : >> { %990 = vst [vmem:[%s1506_s0 + $0x50] sm:$0xff] %v989_v57 }
 0x202   : >> { %992 = vst [vmem:[%s1506_s0 + $0x58] sm:$0xff] %v991_v58  ;;  %965 = sbr.rel (!%p962_p4) target bundleno = 502 (0x1f6), region = 144 }
 0x203   : >> { %994 = vst [vmem:[%s1506_s0 + $0x60] sm:$0xff] %v993_v59 }
 0x204   : >> { %996 = vst [vmem:[%s1506_s0 + $0x68] sm:$0xff] %v995_v60 }
 0x205   : >> { %998 = vst [vmem:[%s1506_s0 + $0x70] sm:$0xff] %v997_v61 }
 0x206   : >> { %1000 = vst [vmem:[%s1506_s0 + $0x78] sm:$0xff] %v999_v62  ;;  %s2040_s0 = smov %s1007_s7 }
 0x207 PF: > { %s2008_s9 = sand.u32 15, %s2050_s25   ;;  %s1276_s8 = sshll.u32 %s1935_s29, 7 }
 0x208   : > { %s1012_s23 = scalar_lea.vmem %s1671_s12, %s1276_s8 [#allocation6]   ;;  %s1014_s14 = scalar_lea.vmem %s1929_s13, %s1276_s8  }
 0x209   : > { %p1255_p5 = scmp.le.s32.totalorder %s2008_s9, 0 }
 0x20a   : > { %s1520_s19 = smov (!%p1255_p5), %s1014_s14   ;;  %s1524_s10 = smov (!%p1255_p5), %s1012_s23  }
 0x20b   : > { %1113 = sbr.rel (%p1255_p5) target bundleno = 536 (0x218), region = 149  ;;  %s1528_s20 = smov (!%p1255_p5), 0  }
 0x20c   : > { %s1532_s11 = smov (!%p1255_p5), 0  }
 0x210 LB: >> { %v1024_v63 = vld [vmem:[%s1526_s10] sm:$0xff]  ;;  %s1026_s25 = sadd.s32 1, %s1530_s20  ;;  %s1018_s11 = sadd.s32 1, %s1534_s11   ;;  %s1534_s11 = sphi %s1532_s11, %s1018_s11   ;;  %s1530_s20 = sphi %s1528_s20, %s1529_s20   ;;  %s1526_s10 = sphi %s1524_s10, %s1031_s10   ;;  %s1522_s19 = sphi %s1520_s19, %s1032_s19  }
 0x211   : >> { %1025 = vst [vmem:[%s1522_s19] sm:$0xff] %v1024_v63  ;;  %p1027_p6 = scmp.ge.s32.totalorder %s1026_s25, %s2008_s9  ;;  %p1017_p9 = scmp.ge.s32.totalorder %s1018_s11, %s2008_s9 }
 0x213   : >> { %s2054_s25 = smov (%p1027_p6, %s1026_s25), 0  ;;  %1020 = sbr.rel (!%p1017_p9) target bundleno = 528 (0x210), region = 155 }
 0x214   : >> { %s1256_s12 = sshll.u32 %s2054_s25, 3  ;;  %s1529_s20 = smov %s2054_s25  }
 0x215   : >> { %s1031_s10 = scalar_lea.vmem %s1012_s23, %s1256_s12 [#allocation6]   ;;  %s1032_s19 = scalar_lea.vmem %s1014_s14, %s1256_s12  }
 0x218 PF: > { %p16_p10 = scmp.ge.s32.totalorder %s1594_s24, 4   ;;  %s2043_s20 = smov %s1494_s21 }
 0x219   : > { %s2044_s21 = smov %s1498_s22  ;;  %s2045_s22 = smov %s1604_s27 }
 0x21a   : > { %s2046_s23 = smov %s1594_s24  ;;  %18 = sbr.rel (!%p16_p10) target bundleno = 5 (0x5), region = 166 }
 0x21f   :  { %1048 = vsyncpa [#allocation5], 1 }
 0x220   :  { %1050 = vsyncpa [#allocation5 + $0x1], 1 }

</bundles_post_ra>
